<compile_context>
chip_gen: v7x
topology: tpu7x:2x2x1
jax: 0.10.0
libtpu: 0.0.40
codegen_flags: <defaults>
</compile_context>

<pallas_src>
import jax
import jax.numpy as jnp
from jax.experimental import pallas as pl
from jax.experimental.pallas import tpu as pltpu


def _pos_encoding_kernel(x_ref, pos_cls_ref, pos_patch_ref, o_ref):
    # x_ref:         (TB, N,   TD)  patch embeddings for TB batch elements
    # pos_cls_ref:   (1,  1,   TD)  cls_token + pos_embeddings[:, 0]
    # pos_patch_ref: (1,  N,   TD)  pos_embeddings[:, 1:]
    # o_ref:         (TB, N+1, TD)  output
    tb, _, td = o_ref.shape
    # CLS row (row 0 of every batch element): broadcast of the precomputed sum.
    o_ref[:, 0:1, :] = jnp.broadcast_to(pos_cls_ref[...], (tb, 1, td)).astype(o_ref.dtype)
    # Patch rows: full-tile aligned add; pos_patch broadcasts over the batch dim.
    o_ref[:, 1:, :] = (x_ref[...] + pos_patch_ref[...]).astype(o_ref.dtype)


def _vmem_budget():
    """(tile budget, vmem_limit_bytes), derived from the chip's actual VMEM capacity."""
    try:
        cap = pltpu.get_tpu_info().vmem_capacity_bytes
    except Exception:
        cap = 64 * 1024 * 1024  # conservative (v7x per-TC) fallback
    return cap // 3, cap // 2


def _choose_tiles(B, N, D, itemsize, budget, param_bufs):
    """Pick (tb, td): batch tile and feature (lane) tile.

    Prefers td = D with the largest batch tile that fits `budget` (double-buffered x/out
    tiles + param blocks), capped so there are >=4 batch grid steps when possible (v7x
    megacore balance). If even tb=1 does not fit, tiles the lane dim in multiples of 128.
    """
    def usage(tb, td):
        x_t = tb * N * td * itemsize
        o_t = tb * (N + 1) * td * itemsize
        p_t = (N + 1) * td * itemsize
        return 2 * (x_t + o_t) + param_bufs * p_t

    # Preferred: keep the full feature dim in one lane-dense block.
    per_b = 2 * (N + (N + 1)) * D * itemsize
    fixed = param_bufs * (N + 1) * D * itemsize
    tb = (budget - fixed) // per_b
    if tb >= 1:
        tb = min(int(tb), B)
        if B >= 2:
            tb = min(tb, max(1, pl.cdiv(B, 4)))  # prefer >=4 grid steps for megacore
        return tb, D

    # Fallback for very large N*D: tile the feature dim (multiple of 128), tb = 1.
    if D < 256:
        return 1, D  # cannot split lanes below 128; rely on vmem_limit headroom
    td = (D // 128) * 128
    while td > 128 and usage(1, td) > budget:
        td -= 128
    return 1, td


def _pallas_call(x, pos_cls, pos_patch, tb, td, grid, vmem_limit, cost, param_pipeline_mode):
    B, N, D = x.shape
    param_kw = {} if param_pipeline_mode is None else {"pipeline_mode": param_pipeline_mode}
    return pl.pallas_call(
        _pos_encoding_kernel,
        out_shape=jax.ShapeDtypeStruct((B, N + 1, D), x.dtype),
        grid_spec=pltpu.PrefetchScalarGridSpec(
            num_scalar_prefetch=0,
            grid=grid,
            in_specs=[
                pl.BlockSpec((tb, N, td), lambda b, j: (b, 0, j)),            # x
                pl.BlockSpec((1, 1, td), lambda b, j: (0, 0, j), **param_kw),  # pos_cls
                pl.BlockSpec((1, N, td), lambda b, j: (0, 0, j), **param_kw),  # pos_patch
            ],
            out_specs=pl.BlockSpec((tb, N + 1, td), lambda b, j: (b, 0, j)),
        ),
        compiler_params=pltpu.CompilerParams(
            dimension_semantics=("parallel", "parallel"),
            vmem_limit_bytes=vmem_limit,
        ),
        cost_estimate=cost,
    )(x, pos_cls, pos_patch)


def positional_encoding(x, cls_token, pos_embeddings, *, tile_budget_bytes=None):
    """
    Args:
      x:              (B, N, D)   patch embeddings
      cls_token:      (1, 1, D)   learnable CLS token
      pos_embeddings: (1, N+1, D) learnable positional embeddings
      tile_budget_bytes: optional override of the VMEM tile budget (testing / tuning).
    Returns:
      (B, N+1, D)
    """
    B, N, D = x.shape
    assert cls_token.shape == (1, 1, D)
    assert pos_embeddings.shape == (1, N + 1, D)

    # Fold CLS + pos row 0 once in f32 (stable vs f32 reference even for bf16 x), then
    # run the HBM-bound kernel in x's dtype. Pre-shifting pos_patch means the kernel
    # never slices a parameter at a sublane offset.
    pos_cls = (cls_token.astype(jnp.float32)
               + pos_embeddings[:, 0:1, :].astype(jnp.float32)).astype(x.dtype)
    pos_patch = pos_embeddings[:, 1:, :].astype(x.dtype)

    itemsize = jnp.dtype(x.dtype).itemsize
    tile_budget, vmem_limit = _vmem_budget()
    if tile_budget_bytes is not None:
        tile_budget = tile_budget_bytes

    tb, td = _choose_tiles(B, N, D, itemsize, tile_budget, param_bufs=1)
    grid = (pl.cdiv(B, tb), pl.cdiv(D, td))  # ragged last blocks are fine (elementwise)

    cost = pl.CostEstimate(
        flops=B * N * D,
        transcendentals=0,
        bytes_accessed=(B * N * D + B * (N + 1) * D + (N + 1) * D) * itemsize,
    )

    try:
        # Params have a constant index_map; a single buffer frees VMEM for bigger tiles.
        return _pallas_call(x, pos_cls, pos_patch, tb, td, grid, vmem_limit, cost,
                            param_pipeline_mode=pl.Buffered(1))
    except Exception:
        # Fallback if this lowering rejects buffer_count=1 (costs only ~(N+1)*D bytes).
        return _pallas_call(x, pos_cls, pos_patch, tb, td, grid, vmem_limit, cost,
                            param_pipeline_mode=None)


if __name__ == "__main__":
    key = jax.random.PRNGKey(0)

    def run_case(B, N, D, case_key, tile_budget_bytes=None):
        kx, kcls, kpos = jax.random.split(case_key, 3)
        x = jax.random.normal(kx, (B, N, D), dtype=jnp.float32)
        # Parameters initialized like nn.Parameter(torch.randn(...)) -> standard normal.
        cls_token = jax.random.normal(kcls, (1, 1, D), dtype=jnp.float32)
        pos_embeddings = jax.random.normal(kpos, (1, N + 1, D), dtype=jnp.float32)

        out = jax.block_until_ready(
            positional_encoding(x, cls_token, pos_embeddings,
                                tile_budget_bytes=tile_budget_bytes))

        ref = jnp.concatenate([jnp.broadcast_to(cls_token, (B, 1, D)), x],
                              axis=1) + pos_embeddings
        assert out.shape == (B, N + 1, D)
        assert jnp.allclose(out, ref, atol=1e-6), "mismatch vs reference"

    k1, k2 = jax.random.split(key)
    # Case 1: default tiling; B=5 exercises the cdiv grid with a ragged last batch block.
    run_case(B=5, N=16, D=128, case_key=k1)
    # Case 2: tiny tile budget forces the feature-dim (lane) tiling fallback path.
    run_case(B=2, N=16, D=256, case_key=k2, tile_budget_bytes=50 * 1024)

    print("KERNEL_OK")
</pallas_src>

<mosaic_0001>
module attributes {stable_mosaic.version = 11 : i64} {
  func.func @_pos_encoding_kernel(%arg0: i32, %arg1: i32, %arg2: memref<2x16x128xf32, #tpu.memory_space<vmem>>, %arg3: memref<1x1x128xf32, #tpu.memory_space<vmem>>, %arg4: memref<1x16x128xf32, #tpu.memory_space<vmem>>, %arg5: memref<2x17x128xf32, #tpu.memory_space<vmem>>) attributes {dimension_semantics = [#tpu.dimension_semantics<parallel>, #tpu.dimension_semantics<parallel>], iteration_bounds = array<i64: 3, 1>, scalar_prefetch = 0 : i64, scratch_operands = 0 : i64, tpu.core_type = #tpu.core_type<tc>, window_params = [{transform_indices = @transform_0, window_bounds = array<i64: 2, 16, 128>}, {pipeline_mode = #tpu.pipeline_mode<synchronous>, transform_indices = @transform_1, window_bounds = array<i64: 1, 1, 128>}, {pipeline_mode = #tpu.pipeline_mode<synchronous>, transform_indices = @transform_2, window_bounds = array<i64: 1, 16, 128>}, {transform_indices = @transform_3, window_bounds = array<i64: 2, 17, 128>}]} {
    %c0 = arith.constant 0 : index
    %c0_0 = arith.constant 0 : index
    %c0_1 = arith.constant 0 : index
    %0 = vector.load %arg3[%c0, %c0_0, %c0_1] : memref<1x1x128xf32, #tpu.memory_space<vmem>>, vector<1x1x128xf32>
    %1 = vector.shape_cast %0 : vector<1x1x128xf32> to vector<1x1x128xf32>
    %2 = vector.broadcast %1 : vector<1x1x128xf32> to vector<2x1x128xf32>
    %c0_2 = arith.constant 0 : index
    %c0_3 = arith.constant 0 : index
    %c0_4 = arith.constant 0 : index
    %3 = vector.load %arg5[%c0_2, %c0_3, %c0_4] : memref<2x17x128xf32, #tpu.memory_space<vmem>>, vector<2x1x128xf32>
    tpu.vector_store %arg5[%c0_2, %c0_3, %c0_4], %2 {strides = array<i32>} : memref<2x17x128xf32, #tpu.memory_space<vmem>>, vector<2x1x128xf32>,
    %c0_5 = arith.constant 0 : index
    %c0_6 = arith.constant 0 : index
    %c0_7 = arith.constant 0 : index
    %4 = vector.load %arg2[%c0_5, %c0_6, %c0_7] : memref<2x16x128xf32, #tpu.memory_space<vmem>>, vector<2x16x128xf32>
    %c0_8 = arith.constant 0 : index
    %c0_9 = arith.constant 0 : index
    %c0_10 = arith.constant 0 : index
    %5 = vector.load %arg4[%c0_8, %c0_9, %c0_10] : memref<1x16x128xf32, #tpu.memory_space<vmem>>, vector<1x16x128xf32>
    %6 = vector.broadcast %5 : vector<1x16x128xf32> to vector<2x16x128xf32>
    %7 = arith.addf %4, %6 : vector<2x16x128xf32>
    %c0_11 = arith.constant 0 : index
    %c1 = arith.constant 1 : index
    %c0_12 = arith.constant 0 : index
    %8 = vector.load %arg5[%c0_11, %c1, %c0_12] : memref<2x17x128xf32, #tpu.memory_space<vmem>>, vector<2x16x128xf32>
    tpu.vector_store %arg5[%c0_11, %c1, %c0_12], %7 {strides = array<i32>} : memref<2x17x128xf32, #tpu.memory_space<vmem>>, vector<2x16x128xf32>,
    return
  }
  func.func @transform_0(%arg0: i32, %arg1: i32) -> (i32, i32, i32) {
    %c0_i32 = arith.constant 0 : i32
    %c0_i32_0 = arith.constant 0 : i32
    return %arg0, %c0_i32, %arg1 : i32, i32, i32
  }
  func.func @transform_1(%arg0: i32, %arg1: i32) -> (i32, i32, i32) {
    %c0_i32 = arith.constant 0 : i32
    %c0_i32_0 = arith.constant 0 : i32
    %c0_i32_1 = arith.constant 0 : i32
    return %c0_i32, %c0_i32_0, %arg1 : i32, i32, i32
  }
  func.func @transform_2(%arg0: i32, %arg1: i32) -> (i32, i32, i32) {
    %c0_i32 = arith.constant 0 : i32
    %c0_i32_0 = arith.constant 0 : i32
    %c0_i32_1 = arith.constant 0 : i32
    return %c0_i32, %c0_i32_0, %arg1 : i32, i32, i32
  }
  func.func @transform_3(%arg0: i32, %arg1: i32) -> (i32, i32, i32) {
    %c0_i32 = arith.constant 0 : i32
    %c0_i32_0 = arith.constant 0 : i32
    return %arg0, %c0_i32, %arg1 : i32, i32, i32
  }
}

module attributes {stable_mosaic.version = 11 : i64} {
  func.func @_pos_encoding_kernel(%arg0: i32, %arg1: i32, %arg2: memref<2x16x128xf32, #tpu.memory_space<vmem>>, %arg3: memref<1x1x128xf32, #tpu.memory_space<vmem>>, %arg4: memref<1x16x128xf32, #tpu.memory_space<vmem>>, %arg5: memref<2x17x128xf32, #tpu.memory_space<vmem>>) attributes {dimension_semantics = [#tpu.dimension_semantics<parallel>, #tpu.dimension_semantics<parallel>], iteration_bounds = array<i64: 3, 1>, scalar_prefetch = 0 : i64, scratch_operands = 0 : i64, tpu.core_type = #tpu.core_type<tc>, window_params = [{transform_indices = @transform_0, window_bounds = array<i64: 2, 16, 128>}, {transform_indices = @transform_1, window_bounds = array<i64: 1, 1, 128>}, {transform_indices = @transform_2, window_bounds = array<i64: 1, 16, 128>}, {transform_indices = @transform_3, window_bounds = array<i64: 2, 17, 128>}]} {
    %c0 = arith.constant 0 : index
    %c0_0 = arith.constant 0 : index
    %c0_1 = arith.constant 0 : index
    %0 = vector.load %arg3[%c0, %c0_0, %c0_1] : memref<1x1x128xf32, #tpu.memory_space<vmem>>, vector<1x1x128xf32>
    %1 = vector.shape_cast %0 : vector<1x1x128xf32> to vector<1x1x128xf32>
    %2 = vector.broadcast %1 : vector<1x1x128xf32> to vector<2x1x128xf32>
    %c0_2 = arith.constant 0 : index
    %c0_3 = arith.constant 0 : index
    %c0_4 = arith.constant 0 : index
    %3 = vector.load %arg5[%c0_2, %c0_3, %c0_4] : memref<2x17x128xf32, #tpu.memory_space<vmem>>, vector<2x1x128xf32>
    tpu.vector_store %arg5[%c0_2, %c0_3, %c0_4], %2 {strides = array<i32>} : memref<2x17x128xf32, #tpu.memory_space<vmem>>, vector<2x1x128xf32>,
    %c0_5 = arith.constant 0 : index
    %c0_6 = arith.constant 0 : index
    %c0_7 = arith.constant 0 : index
    %4 = vector.load %arg2[%c0_5, %c0_6, %c0_7] : memref<2x16x128xf32, #tpu.memory_space<vmem>>, vector<2x16x128xf32>
    %c0_8 = arith.constant 0 : index
    %c0_9 = arith.constant 0 : index
    %c0_10 = arith.constant 0 : index
    %5 = vector.load %arg4[%c0_8, %c0_9, %c0_10] : memref<1x16x128xf32, #tpu.memory_space<vmem>>, vector<1x16x128xf32>
    %6 = vector.broadcast %5 : vector<1x16x128xf32> to vector<2x16x128xf32>
    %7 = arith.addf %4, %6 : vector<2x16x128xf32>
    %c0_11 = arith.constant 0 : index
    %c1 = arith.constant 1 : index
    %c0_12 = arith.constant 0 : index
    %8 = vector.load %arg5[%c0_11, %c1, %c0_12] : memref<2x17x128xf32, #tpu.memory_space<vmem>>, vector<2x16x128xf32>
    tpu.vector_store %arg5[%c0_11, %c1, %c0_12], %7 {strides = array<i32>} : memref<2x17x128xf32, #tpu.memory_space<vmem>>, vector<2x16x128xf32>,
    return
  }
  func.func @transform_0(%arg0: i32, %arg1: i32) -> (i32, i32, i32) {
    %c0_i32 = arith.constant 0 : i32
    %c0_i32_0 = arith.constant 0 : i32
    return %arg0, %c0_i32, %arg1 : i32, i32, i32
  }
  func.func @transform_1(%arg0: i32, %arg1: i32) -> (i32, i32, i32) {
    %c0_i32 = arith.constant 0 : i32
    %c0_i32_0 = arith.constant 0 : i32
    %c0_i32_1 = arith.constant 0 : i32
    return %c0_i32, %c0_i32_0, %arg1 : i32, i32, i32
  }
  func.func @transform_2(%arg0: i32, %arg1: i32) -> (i32, i32, i32) {
    %c0_i32 = arith.constant 0 : i32
    %c0_i32_0 = arith.constant 0 : i32
    %c0_i32_1 = arith.constant 0 : i32
    return %c0_i32, %c0_i32_0, %arg1 : i32, i32, i32
  }
  func.func @transform_3(%arg0: i32, %arg1: i32) -> (i32, i32, i32) {
    %c0_i32 = arith.constant 0 : i32
    %c0_i32_0 = arith.constant 0 : i32
    return %arg0, %c0_i32, %arg1 : i32, i32, i32
  }
}

</mosaic_0001>

<bundles_post_ra>
// kernel: tpu_custom_call.1
= control target key start
LH: loop header
LB: loop body
LE: loop exit
PB: predicated region body
PF: predicated region fallthrough
CT: control target
= control target key end

     0   :  { %8 = vsyncpa [#allocation3], 0  ;;  %s922_s0 = inlined_call_operand.hbm [shape: f32[5,16,128], index: 0, kind: input, shape index: {}]   ;;  %s923_s1 = inlined_call_operand.vmem [shape: f32[1,1,128], index: 1, kind: input, shape index: {}]   ;;  %s924_s2 = inlined_call_operand.hbm [shape: f32[1,16,128], index: 2, kind: input, shape index: {}]   ;;  %s925_s3 = inlined_call_operand.hbm [shape: f32[5,17,128], index: 3, kind: output, shape index: {}]  }
   0x1   :  { %10 = vsyncpa [#allocation3 + $0x1], 0 }
   0x2   :  { %11 = vsyncpa [#allocation6], 0 }
   0x3   :  { %12 = vsyncpa [#allocation4], 0 }
   0x4   :  { %14 = vsyncpa [#allocation4 + $0x1], 0  ;;  %s694_s12 = smov 0   ;;  %s696_s13 = smov 0  }
   0x5   :  { %s698_s14 = smov 0   ;;  %s700_s15 = smov 0  }
   0x6   :  { %s702_s16 = smov 0   ;;  %s704_s17 = smov 0  }
   0x7 LB: > { %s413_s18 = sadd.s32 4294967295, %s663_s17   ;;  %s414_s19 = sadd.s32 4294967294, %s663_s17   ;;  %s663_s17 = sphi %s704_s17, %s20_s17   ;;  %s659_s16 = sphi %s702_s16, %s947_s16   ;;  %s655_s15 = sphi %s700_s15, %s946_s15   ;;  %s651_s14 = sphi %s698_s14, %s945_s14   ;;  %s647_s13 = sphi %s696_s13, %s944_s13   ;;  %s643_s12 = sphi %s694_s12, %s943_s12  }
   0x8   : > { %s32_s20 = sadd.s32 1, %s659_s16  ;;  %s41_s21 = sadd.s32 1, %s651_s14 }
   0x9   : > { %p34_p0 = scmp.ge.s32.totalorder %s32_s20, 3  ;;  %p48_p1 = scmp.ne.s32.totalorder %s651_s14, %s647_s13 }
   0xa   : > { %p49_p2 = scmp.eq.s32.totalorder %s663_s17, 0  ;;  %p54_p3 = scmp.ne.s32.totalorder %s647_s13, %s643_s12 }
   0xb   : > { %s949_s20 = smov (%p34_p0, %s32_s20), 0  ;;  %p739_p5 = scmp.eq.s32.totalorder %s413_s18, 0 }
   0xc   : > { %p735_p4 = por %p49_p2, %p48_p1  ;;  %s36_s24 = ssub.s32 %s659_s16, %s949_s20 }
   0xd   : > { %s931_s23 = scalar_select %p739_p5, 1, 0 }
   0xe   : > { %s930_s22 = scalar_select %p735_p4, 1, 0 }
   0xf   : > { %p132_p6 = scmp.eq.s32.totalorder %s413_s18, 2  ;;  %p39_p7 = scmp.eq.s32.totalorder %s36_s24, 0 }
  0x10   : > { %p747_p8 = por %p739_p5, %p54_p3  ;;  %p138_p10 = scmp.eq.s32.totalorder %s414_s19, 2 }
  0x11   : > { %p751_p9 = por %p132_p6, %p48_p1  ;;  %p415_p12 = scmp.ge.s32.totalorder %s663_s17, 1 }
  0x12   : > { %s932_s25 = scalar_select %p747_p8, 1, 0 }
  0x13   : > { %s933_s26 = scalar_select %p751_p9, 1, 0 }
  0x14   : > { %s756_s27 = scalar_select %p39_p7, %s651_s14, %s41_s21  }
  0x15   : > { %p758_p11 = por %p138_p10, %p54_p3  ;;  %p145_p13 = scmp.lt.s32.totalorder %s663_s17, 4 }
  0x16   : > { %s665_s30 = smov [#allocation5]   ;;  %s521_s8 = scalar_lea.hbm %s924_s2, 256 }
  0x17   : > { %s934_s28 = scalar_select %p758_p11, 1, 0 }
  0x18   : > { %p764_p0 = pnand %p415_p12, %p145_p13  ;;  %s165_s4 = sshll.u32 %s665_s30, 4  ;;  %s166_s4 = int_to_ptr.vmem [resolvable:$true] %s165_s4 }
  0x19   : > { %p522_p3 = scmp.ne.s32.totalorder %s924_s2, %s521_s8  ;;  %p528_p12 = scmp.lt.u32.totalorder %s521_s8, %s924_s2 }
  0x1a   : > { %s935_s29 = scalar_select %p764_p0, 1, 0 }
  0x1b   : > { %p455_p1 = pneg %p764_p0 }
  0x1d   : > { %p772_p2 = pnand %p455_p1, %p739_p5 }
  0x1f   : > { %p523_p6 = pneg %p772_p2 }
  0x21   : > { %p524_p7 = pnand %p523_p6, %p522_p3 }
  0x23   : > { %p525_p10 = pneg %p524_p7 }
  0x25   : > { %p530_p13 = pnand %p528_p12, %p525_p10 }
  0x27   : > { %533 = shalt.err (!%p530_p13)
}
  0x28   : > { %s534_s19 = scalar_lea.vmem %s166_s4, 256  ;;  %p542_p5 = scmp.lt.s32.totalorder %s166_s4, %s166_s4 }
  0x29   : > { %p535_p1 = scmp.ne.s32.totalorder %s166_s4, %s534_s19  ;;  %p543_p8 = scmp.lt.s32.totalorder %s534_s19, %s534_s19 }
  0x2b   : > { %p537_p11 = pnand %p535_p1, %p523_p6  ;;  %p544_p0 = por %p543_p8, %p542_p5 }
  0x2d   : > { %p538_p9 = pneg %p537_p11 }
  0x2f   : > { %p545_p4 = pnand %p544_p0, %p538_p9 }
  0x31   : > { %548 = shalt.err (!%p545_p4)
}
  0x32   : > { %s666_s21 = smov 128   ;;  %s667_s24 = smov 8  }
  0x33   : > { %458 = dma.hbm_to_vmem [thread:$0]  (!%p772_p2), %s924_s2, 256, %s166_s4, [#allocation6], %s666_s21, %s666_s21, %s667_s24  }
  0x34   : > { %p418_p3 = scmp.ge.s32.totalorder %s663_s17, 3 }
  0x35   : > { %p937_p7 = scmp.ne.s32.totalorder (!%p418_p3), %s930_s22, 0 }
  0x36   : > { %175 = sbr.rel (%p418_p3) target bundleno = 96 (0x60), region = 24 }
  0x3d   : > { %178 = sbr.rel (!%p937_p7) target bundleno = 96 (0x60), region = 28  ;;  %s179_s7 = sand.u32 (%p937_p7), 1, %s651_s14  }
  0x3e   : > { %s420_s8 = sshll.u32 (%p937_p7), %s659_s16, 1  ;;  %s419_s9 = sshll.u32 (%p937_p7), %s179_s7, 5 }
  0x3f   : > { %s185_s10 = ssub.s32 (%p937_p7), 5, %s420_s8  ;;  %s800_s18 = scalar_lea.sflag (%p937_p7), [#allocation3], %s179_s7 }
  0x40   : > { %p186_p4 = scmp.lt.s32.totalorder (%p937_p7), %s185_s10, 2  ;;  %s183_s4 = scalar_lea.vmem (%p937_p7), [#allocation2], %s419_s9 }
  0x44   : > { %s951_s10 = smov (!%p186_p4, %s185_s10), 2 }
  0x45   : > { %s797_s11 = sshll.u32 %s951_s10, 8 }
  0x46   : > { %s191_s5 = ssub.s32 512, %s797_s11 }
  0x47   : > { %192 = vsyncadd %s800_s18, %s191_s5  ;;  %p423_p5 = scmp.ne.s32.totalorder %s797_s11, 0  ;;  %s444_s22 = sshll.u32 %s659_s16, 9 }
  0x48   : > { %s808_s24 = scalar_lea.hbm %s922_s0, %s444_s22  ;;  %s200_s30 = sshll.u32 %s183_s4, 4  ;;  %s810_s30 = int_to_ptr.vmem [resolvable:$true] %s200_s30 }
  0x49   : > { %s549_s6 = scalar_lea.hbm %s808_s24, %s797_s11  ;;  %s553_s9 = scalar_lea.hbm %s922_s0, 1280 }
  0x4a   : > { %p550_p8 = scmp.ne.s32.totalorder %s808_s24, %s549_s6  ;;  %p554_p0 = scmp.lt.u32.totalorder %s808_s24, %s922_s0 }
  0x4b   : > { %p555_p2 = scmp.lt.u32.totalorder %s553_s9, %s549_s6  ;;  %p557_p10 = scmp.lt.u32.totalorder %s549_s6, %s808_s24 }
  0x4c   : > { %p551_p9 = pnand %p550_p8, %p423_p5 }
  0x4d   : > { %p556_p6 = por %p555_p2, %p554_p0 }
  0x4e   : > { %p552_p11 = pneg %p551_p9 }
  0x4f   : > { %p558_p12 = por %p557_p10, %p556_p6 }
  0x51   : > { %p559_p13 = pnand %p558_p12, %p552_p11 }
  0x53   : > { %562 = shalt.err (!%p559_p13)
}
  0x54   : > { %s563_s4 = scalar_lea.vmem %s810_s30, %s797_s11  ;;  %s668_s22 = smov [#allocation2]  }
  0x55   : > { %p564_p1 = scmp.ne.s32.totalorder %s810_s30, %s563_s4  ;;  %s567_s19 = sshll.u32 %s668_s22, 4  ;;  %s568_s19 = int_to_ptr.vmem [resolvable:$false] %s567_s19 }
  0x56   : > { %s569_s21 = scalar_lea.vmem %s568_s19, 1024  ;;  %p570_p4 = scmp.lt.s32.totalorder %s810_s30, %s568_s19 }
  0x57   : > { %p565_p3 = pnand %p564_p1, %p423_p5  ;;  %p571_p8 = scmp.lt.s32.totalorder %s569_s21, %s563_s4 }
  0x59   : > { %p566_p7 = pneg %p565_p3  ;;  %p572_p9 = por %p571_p8, %p570_p4 }
  0x5b   : > { %p573_p0 = pnand %p572_p9, %p566_p7 }
  0x5d   : > { %576 = shalt.err (!%p573_p0)
}
  0x5e   : > { %s669_s6 = smov 128   ;;  %s670_s7 = smov 8  }
  0x5f   : > { %206 = dma.hbm_to_vmem [thread:$0]  (%p423_p5), %s808_s24, %s797_s11, %s810_s30, %s800_s18, %s669_s6, %s669_s6, %s670_s7  }
  0x60 PF: > { %p938_p11 = scmp.ne.s32.totalorder %s935_s29, 0 }
  0x61   : > { %s840_s8 = sand.u32 (!%p938_p11), 1, %s647_s13   ;;  %p939_p2 = scmp.ne.s32.totalorder (!%p938_p11), %s932_s25, 0 }
  0x62   : > { %212 = sbr.rel (%p938_p11) target bundleno = 148 (0x94), region = 32  ;;  %s430_s9 = sshll.u32 (!%p938_p11), %s840_s8, 5 }
  0x63   : > { %s215_s10 = scalar_lea.sflag (!%p938_p11), [#allocation3], %s840_s8  ;;  %s218_s5 = scalar_lea.vmem (!%p938_p11), [#allocation2], %s430_s9 }
  0x69   : > { %630 = dma.done.wait (%p939_p2), %s215_s10, 512  }
  0x6a   : > { %632 = vsyncadd (%p939_p2), %s215_s10, 4294966784  ;;  %p940_p5 = scmp.ne.s32.totalorder %s931_s23, 0 }
  0x6c   : > { %634 = dma.done.wait (%p940_p5), [#allocation6], 256  }
  0x6d   : > { %636 = vsyncadd (%p940_p5), [#allocation6], 4294967040  ;;  %s447_s29 = smul.u32 48, %s840_s8  ;;  %v263_v0 = vld [vmem:[%s923_s1] sm:$0x1]  ;;  %v267_v4 = vld [vmem:[%s218_s5 + $0x8] sm:$0xff] }
  0x6e   : > { %v266_v1 = vld [vmem:[%s218_s5] sm:$0xff]  ;;  %v271_v5 = vld [vmem:[#allocation5 + $0x8] sm:$0xff]  ;;  %v268_v6 = vld [vmem:[%s218_s5 + $0x10] sm:$0xff]  ;;  %s281_s23 = scalar_lea.sflag [#allocation4], %s840_s8  ;;  %p941_p6 = scmp.ne.s32.totalorder %s933_s26, 0 }
  0x6f   : > { %v270_v2 = vld [vmem:[#allocation5] sm:$0xff]  ;;  %s247_s24 = scalar_lea.vmem [#allocation7], %s447_s29  ;;  %v273_v7 = vadd.f32 %v271_v5, %v267_v4  ;;  %v269_v9 = vld [vmem:[%s218_s5 + $0x18] sm:$0xff]  ;;  %s432_s25 = sshll.u32 (%p941_p6), %s655_s15, 1 }
  0x70   : > { %264 = vst [vmem:[%s247_s24] sm:$0x1] %v263_v0  ;;  %265 = vst [vmem:[%s247_s24 + $0x18] sm:$0x1] %v263_v0  ;;  %v272_v3 = vadd.f32 %v270_v2, %v266_v1  ;;  %v274_v8 = vadd.f32 %v270_v2, %v268_v6  ;;  %v275_v10 = vadd.f32 %v271_v5, %v269_v9  ;;  %287 = sbr.rel (!%p941_p6) target bundleno = 148 (0x94), region = 44  ;;  %s289_s30 = ssub.s32 (%p941_p6), 5, %s432_s25 }
  0x71   : > { %277 = vst [vmem:[%s247_s24 + $0x9] sm:$0xff] %v273_v7  ;;  %p290_p10 = scmp.lt.s32.totalorder (%p941_p6), %s289_s30, 2 }
  0x72   : > { %276 = vst [vmem:[%s247_s24 + $0x1] sm:$0xff] %v272_v3  ;;  %278 = vst [vmem:[%s247_s24 + $0x19] sm:$0xff] %v274_v8 }
  0x73   : > { %279 = vst [vmem:[%s247_s24 + $0x21] sm:$0xff] %v275_v10 }
  0x77   : > { %s953_s30 = smov (!%p290_p10, %s289_s30), 2 }
  0x78   : > { %s860_s4 = smul.u32 384, %s953_s30 }
  0x7a   : > { %s295_s22 = ssub.s32 768, %s860_s4 }
  0x7b   : > { %296 = vsyncadd %s281_s23, %s295_s22  ;;  %p435_p12 = scmp.ne.s32.totalorder %s860_s4, 0  ;;  %s448_s19 = smul.u32 768, %s655_s15 }
  0x7c   : > { %s304_s26 = sshll.u32 %s247_s24, 4  ;;  %s671_s10 = smov [#allocation7]   ;;  %s872_s26 = int_to_ptr.vmem [resolvable:$true] %s304_s26 }
  0x7d   : > { %s870_s7 = scalar_lea.hbm %s925_s3, %s448_s19  ;;  %s577_s9 = scalar_lea.vmem %s872_s26, %s860_s4 }
  0x7e   : > { %p578_p13 = scmp.ne.s32.totalorder %s872_s26, %s577_s9  ;;  %s581_s5 = sshll.u32 %s671_s10, 4  ;;  %s582_s5 = int_to_ptr.vmem [resolvable:$false] %s581_s5 }
  0x7f   : > { %s583_s15 = scalar_lea.vmem %s582_s5, 1536  ;;  %p584_p7 = scmp.lt.s32.totalorder %s872_s26, %s582_s5 }
  0x80   : > { %p579_p1 = pnand %p578_p13, %p435_p12  ;;  %p585_p4 = scmp.lt.s32.totalorder %s583_s15, %s577_s9 }
  0x82   : > { %p580_p3 = pneg %p579_p1  ;;  %p586_p8 = por %p585_p4, %p584_p7 }
  0x84   : > { %p587_p9 = pnand %p586_p8, %p580_p3 }
  0x86   : > { %590 = shalt.err (!%p587_p9)
}
  0x87   : > { %s591_s29 = scalar_lea.hbm %s870_s7, %s860_s4  ;;  %s595_s24 = scalar_lea.hbm %s925_s3, 1920 }
  0x88   : > { %p592_p0 = scmp.ne.s32.totalorder %s870_s7, %s591_s29  ;;  %p596_p5 = scmp.lt.u32.totalorder %s870_s7, %s925_s3 }
  0x89   : > { %p597_p6 = scmp.lt.u32.totalorder %s595_s24, %s591_s29  ;;  %p599_p13 = scmp.lt.u32.totalorder %s591_s29, %s870_s7 }
  0x8a   : > { %p593_p11 = pnand %p592_p0, %p435_p12 }
  0x8b   : > { %p598_p10 = por %p597_p6, %p596_p5 }
  0x8c   : > { %p594_p2 = pneg %p593_p11 }
  0x8d   : > { %p600_p1 = por %p599_p13, %p598_p10 }
  0x8f   : > { %p601_p3 = pnand %p600_p1, %p594_p2 }
  0x91   : > { %604 = shalt.err (!%p601_p3)
}
  0x92   : > { %s672_s22 = smov 128   ;;  %s673_s19 = smov 8  }
  0x93   : > { %310 = dma.vmem_to_hbm [thread:$0]  (%p435_p12), %s872_s26, %s860_s4, %s870_s7, %s281_s23, %s672_s22, %s672_s22, %s673_s19  }
  0x94 PF: > { %p465_p7 = scmp.ge.s32.totalorder %s663_s17, 2  ;;  %s319_s21 = sand.u32 1, %s643_s12  }
  0x95   : > { %p942_p4 = scmp.ne.s32.totalorder %s934_s28, 0  ;;  %s320_s6 = scalar_lea.sflag [#allocation4], %s319_s21 }
  0x97   : > { %p460_p8 = pnand %p465_p7, %p942_p4 }
  0x99   : > { %638 = dma.done.wait (!%p460_p8), %s320_s6, 768  }
  0x9a   : > { %640 = vsyncadd (!%p460_p8), %s320_s6, 4294966528  ;;  %s20_s17 = sadd.s32 1, %s663_s17   ;;  %s943_s12 = smov %s647_s13 }
  0x9b   : > { %p17_p9 = scmp.ge.s32.totalorder %s20_s17, 5   ;;  %s944_s13 = smov %s651_s14 }
  0x9c   : > { %s945_s14 = smov %s756_s27  ;;  %s946_s15 = smov %s659_s16 }
  0x9d   : > { %s947_s16 = smov %s949_s20  ;;  %19 = sbr.rel (!%p17_p9) target bundleno = 7 (0x7), region = 85 }
  0xa4   :  { %325 = vsyncpa [#allocation3], 1 }
  0xa5   :  { %327 = vsyncpa [#allocation3 + $0x1], 1 }
  0xa6   :  { %328 = vsyncpa [#allocation6], 1 }
  0xa7   :  { %329 = vsyncpa [#allocation4], 1 }
  0xa8   :  { %331 = vsyncpa [#allocation4 + $0x1], 1 }

// kernel: tpu_custom_call.1
= control target key start
LH: loop header
LB: loop body
LE: loop exit
PB: predicated region body
PF: predicated region fallthrough
CT: control target
= control target key end

     0   :  { %8 = vsyncpa [#allocation3], 0  ;;  %s922_s0 = inlined_call_operand.hbm [shape: f32[5,16,128], index: 0, kind: input, shape index: {}]   ;;  %s923_s1 = inlined_call_operand.vmem [shape: f32[1,1,128], index: 1, kind: input, shape index: {}]   ;;  %s924_s2 = inlined_call_operand.hbm [shape: f32[1,16,128], index: 2, kind: input, shape index: {}]   ;;  %s925_s3 = inlined_call_operand.hbm [shape: f32[5,17,128], index: 3, kind: output, shape index: {}]  }
   0x1   :  { %10 = vsyncpa [#allocation3 + $0x1], 0 }
   0x2   :  { %11 = vsyncpa [#allocation6], 0 }
   0x3   :  { %12 = vsyncpa [#allocation4], 0 }
   0x4   :  { %14 = vsyncpa [#allocation4 + $0x1], 0  ;;  %s694_s12 = smov 0   ;;  %s696_s13 = smov 0  }
   0x5   :  { %s698_s14 = smov 0   ;;  %s700_s15 = smov 0  }
   0x6   :  { %s702_s16 = smov 0   ;;  %s704_s17 = smov 0  }
   0x7 LB: > { %s413_s18 = sadd.s32 4294967295, %s663_s17   ;;  %s414_s19 = sadd.s32 4294967294, %s663_s17   ;;  %s663_s17 = sphi %s704_s17, %s20_s17   ;;  %s659_s16 = sphi %s702_s16, %s947_s16   ;;  %s655_s15 = sphi %s700_s15, %s946_s15   ;;  %s651_s14 = sphi %s698_s14, %s945_s14   ;;  %s647_s13 = sphi %s696_s13, %s944_s13   ;;  %s643_s12 = sphi %s694_s12, %s943_s12  }
   0x8   : > { %s32_s20 = sadd.s32 1, %s659_s16  ;;  %s41_s21 = sadd.s32 1, %s651_s14 }
   0x9   : > { %p34_p0 = scmp.ge.s32.totalorder %s32_s20, 3  ;;  %p48_p1 = scmp.ne.s32.totalorder %s651_s14, %s647_s13 }
   0xa   : > { %p49_p2 = scmp.eq.s32.totalorder %s663_s17, 0  ;;  %p54_p3 = scmp.ne.s32.totalorder %s647_s13, %s643_s12 }
   0xb   : > { %s949_s20 = smov (%p34_p0, %s32_s20), 0  ;;  %p739_p5 = scmp.eq.s32.totalorder %s413_s18, 0 }
   0xc   : > { %p735_p4 = por %p49_p2, %p48_p1  ;;  %s36_s24 = ssub.s32 %s659_s16, %s949_s20 }
   0xd   : > { %s931_s23 = scalar_select %p739_p5, 1, 0 }
   0xe   : > { %s930_s22 = scalar_select %p735_p4, 1, 0 }
   0xf   : > { %p132_p6 = scmp.eq.s32.totalorder %s413_s18, 2  ;;  %p39_p7 = scmp.eq.s32.totalorder %s36_s24, 0 }
  0x10   : > { %p747_p8 = por %p739_p5, %p54_p3  ;;  %p138_p10 = scmp.eq.s32.totalorder %s414_s19, 2 }
  0x11   : > { %p751_p9 = por %p132_p6, %p48_p1  ;;  %p415_p12 = scmp.ge.s32.totalorder %s663_s17, 1 }
  0x12   : > { %s932_s25 = scalar_select %p747_p8, 1, 0 }
  0x13   : > { %s933_s26 = scalar_select %p751_p9, 1, 0 }
  0x14   : > { %s756_s27 = scalar_select %p39_p7, %s651_s14, %s41_s21  }
  0x15   : > { %p758_p11 = por %p138_p10, %p54_p3  ;;  %p145_p13 = scmp.lt.s32.totalorder %s663_s17, 4 }
  0x16   : > { %s665_s30 = smov [#allocation5]   ;;  %s521_s8 = scalar_lea.hbm %s924_s2, 256 }
  0x17   : > { %s934_s28 = scalar_select %p758_p11, 1, 0 }
  0x18   : > { %p764_p0 = pnand %p415_p12, %p145_p13  ;;  %s165_s4 = sshll.u32 %s665_s30, 4  ;;  %s166_s4 = int_to_ptr.vmem [resolvable:$true] %s165_s4 }
  0x19   : > { %p522_p3 = scmp.ne.s32.totalorder %s924_s2, %s521_s8  ;;  %p528_p12 = scmp.lt.u32.totalorder %s521_s8, %s924_s2 }
  0x1a   : > { %s935_s29 = scalar_select %p764_p0, 1, 0 }
  0x1b   : > { %p455_p1 = pneg %p764_p0 }
  0x1d   : > { %p772_p2 = pnand %p455_p1, %p739_p5 }
  0x1f   : > { %p523_p6 = pneg %p772_p2 }
  0x21   : > { %p524_p7 = pnand %p523_p6, %p522_p3 }
  0x23   : > { %p525_p10 = pneg %p524_p7 }
  0x25   : > { %p530_p13 = pnand %p528_p12, %p525_p10 }
  0x27   : > { %533 = shalt.err (!%p530_p13)
}
  0x28   : > { %s534_s19 = scalar_lea.vmem %s166_s4, 256  ;;  %p542_p5 = scmp.lt.s32.totalorder %s166_s4, %s166_s4 }
  0x29   : > { %p535_p1 = scmp.ne.s32.totalorder %s166_s4, %s534_s19  ;;  %p543_p8 = scmp.lt.s32.totalorder %s534_s19, %s534_s19 }
  0x2b   : > { %p537_p11 = pnand %p535_p1, %p523_p6  ;;  %p544_p0 = por %p543_p8, %p542_p5 }
  0x2d   : > { %p538_p9 = pneg %p537_p11 }
  0x2f   : > { %p545_p4 = pnand %p544_p0, %p538_p9 }
  0x31   : > { %548 = shalt.err (!%p545_p4)
}
  0x32   : > { %s666_s21 = smov 128   ;;  %s667_s24 = smov 8  }
  0x33   : > { %458 = dma.hbm_to_vmem [thread:$0]  (!%p772_p2), %s924_s2, 256, %s166_s4, [#allocation6], %s666_s21, %s666_s21, %s667_s24  }
  0x34   : > { %p418_p3 = scmp.ge.s32.totalorder %s663_s17, 3 }
  0x35   : > { %p937_p7 = scmp.ne.s32.totalorder (!%p418_p3), %s930_s22, 0 }
  0x36   : > { %175 = sbr.rel (%p418_p3) target bundleno = 96 (0x60), region = 24 }
  0x3d   : > { %178 = sbr.rel (!%p937_p7) target bundleno = 96 (0x60), region = 28  ;;  %s179_s7 = sand.u32 (%p937_p7), 1, %s651_s14  }
  0x3e   : > { %s420_s8 = sshll.u32 (%p937_p7), %s659_s16, 1  ;;  %s419_s9 = sshll.u32 (%p937_p7), %s179_s7, 5 }
  0x3f   : > { %s185_s10 = ssub.s32 (%p937_p7), 5, %s420_s8  ;;  %s800_s18 = scalar_lea.sflag (%p937_p7), [#allocation3], %s179_s7 }
  0x40   : > { %p186_p4 = scmp.lt.s32.totalorder (%p937_p7), %s185_s10, 2  ;;  %s183_s4 = scalar_lea.vmem (%p937_p7), [#allocation2], %s419_s9 }
  0x44   : > { %s951_s10 = smov (!%p186_p4, %s185_s10), 2 }
  0x45   : > { %s797_s11 = sshll.u32 %s951_s10, 8 }
  0x46   : > { %s191_s5 = ssub.s32 512, %s797_s11 }
  0x47   : > { %192 = vsyncadd %s800_s18, %s191_s5  ;;  %p423_p5 = scmp.ne.s32.totalorder %s797_s11, 0  ;;  %s444_s22 = sshll.u32 %s659_s16, 9 }
  0x48   : > { %s808_s24 = scalar_lea.hbm %s922_s0, %s444_s22  ;;  %s200_s30 = sshll.u32 %s183_s4, 4  ;;  %s810_s30 = int_to_ptr.vmem [resolvable:$true] %s200_s30 }
  0x49   : > { %s549_s6 = scalar_lea.hbm %s808_s24, %s797_s11  ;;  %s553_s9 = scalar_lea.hbm %s922_s0, 1280 }
  0x4a   : > { %p550_p8 = scmp.ne.s32.totalorder %s808_s24, %s549_s6  ;;  %p554_p0 = scmp.lt.u32.totalorder %s808_s24, %s922_s0 }
  0x4b   : > { %p555_p2 = scmp.lt.u32.totalorder %s553_s9, %s549_s6  ;;  %p557_p10 = scmp.lt.u32.totalorder %s549_s6, %s808_s24 }
  0x4c   : > { %p551_p9 = pnand %p550_p8, %p423_p5 }
  0x4d   : > { %p556_p6 = por %p555_p2, %p554_p0 }
  0x4e   : > { %p552_p11 = pneg %p551_p9 }
  0x4f   : > { %p558_p12 = por %p557_p10, %p556_p6 }
  0x51   : > { %p559_p13 = pnand %p558_p12, %p552_p11 }
  0x53   : > { %562 = shalt.err (!%p559_p13)
}
  0x54   : > { %s563_s4 = scalar_lea.vmem %s810_s30, %s797_s11  ;;  %s668_s22 = smov [#allocation2]  }
  0x55   : > { %p564_p1 = scmp.ne.s32.totalorder %s810_s30, %s563_s4  ;;  %s567_s19 = sshll.u32 %s668_s22, 4  ;;  %s568_s19 = int_to_ptr.vmem [resolvable:$false] %s567_s19 }
  0x56   : > { %s569_s21 = scalar_lea.vmem %s568_s19, 1024  ;;  %p570_p4 = scmp.lt.s32.totalorder %s810_s30, %s568_s19 }
  0x57   : > { %p565_p3 = pnand %p564_p1, %p423_p5  ;;  %p571_p8 = scmp.lt.s32.totalorder %s569_s21, %s563_s4 }
  0x59   : > { %p566_p7 = pneg %p565_p3  ;;  %p572_p9 = por %p571_p8, %p570_p4 }
  0x5b   : > { %p573_p0 = pnand %p572_p9, %p566_p7 }
  0x5d   : > { %576 = shalt.err (!%p573_p0)
}
  0x5e   : > { %s669_s6 = smov 128   ;;  %s670_s7 = smov 8  }
  0x5f   : > { %206 = dma.hbm_to_vmem [thread:$0]  (%p423_p5), %s808_s24, %s797_s11, %s810_s30, %s800_s18, %s669_s6, %s669_s6, %s670_s7  }
  0x60 PF: > { %p938_p11 = scmp.ne.s32.totalorder %s935_s29, 0 }
  0x61   : > { %s840_s8 = sand.u32 (!%p938_p11), 1, %s647_s13   ;;  %p939_p2 = scmp.ne.s32.totalorder (!%p938_p11), %s932_s25, 0 }
  0x62   : > { %212 = sbr.rel (%p938_p11) target bundleno = 148 (0x94), region = 32  ;;  %s430_s9 = sshll.u32 (!%p938_p11), %s840_s8, 5 }
  0x63   : > { %s215_s10 = scalar_lea.sflag (!%p938_p11), [#allocation3], %s840_s8  ;;  %s218_s5 = scalar_lea.vmem (!%p938_p11), [#allocation2], %s430_s9 }
  0x69   : > { %630 = dma.done.wait (%p939_p2), %s215_s10, 512  }
  0x6a   : > { %632 = vsyncadd (%p939_p2), %s215_s10, 4294966784  ;;  %p940_p5 = scmp.ne.s32.totalorder %s931_s23, 0 }
  0x6c   : > { %634 = dma.done.wait (%p940_p5), [#allocation6], 256  }
  0x6d   : > { %636 = vsyncadd (%p940_p5), [#allocation6], 4294967040  ;;  %s447_s29 = smul.u32 48, %s840_s8  ;;  %v263_v0 = vld [vmem:[%s923_s1] sm:$0x1]  ;;  %v267_v4 = vld [vmem:[%s218_s5 + $0x8] sm:$0xff] }
  0x6e   : > { %v266_v1 = vld [vmem:[%s218_s5] sm:$0xff]  ;;  %v271_v5 = vld [vmem:[#allocation5 + $0x8] sm:$0xff]  ;;  %v268_v6 = vld [vmem:[%s218_s5 + $0x10] sm:$0xff]  ;;  %s281_s23 = scalar_lea.sflag [#allocation4], %s840_s8  ;;  %p941_p6 = scmp.ne.s32.totalorder %s933_s26, 0 }
  0x6f   : > { %v270_v2 = vld [vmem:[#allocation5] sm:$0xff]  ;;  %s247_s24 = scalar_lea.vmem [#allocation7], %s447_s29  ;;  %v273_v7 = vadd.f32 %v271_v5, %v267_v4  ;;  %v269_v9 = vld [vmem:[%s218_s5 + $0x18] sm:$0xff]  ;;  %s432_s25 = sshll.u32 (%p941_p6), %s655_s15, 1 }
  0x70   : > { %264 = vst [vmem:[%s247_s24] sm:$0x1] %v263_v0  ;;  %265 = vst [vmem:[%s247_s24 + $0x18] sm:$0x1] %v263_v0  ;;  %v272_v3 = vadd.f32 %v270_v2, %v266_v1  ;;  %v274_v8 = vadd.f32 %v270_v2, %v268_v6  ;;  %v275_v10 = vadd.f32 %v271_v5, %v269_v9  ;;  %287 = sbr.rel (!%p941_p6) target bundleno = 148 (0x94), region = 44  ;;  %s289_s30 = ssub.s32 (%p941_p6), 5, %s432_s25 }
  0x71   : > { %277 = vst [vmem:[%s247_s24 + $0x9] sm:$0xff] %v273_v7  ;;  %p290_p10 = scmp.lt.s32.totalorder (%p941_p6), %s289_s30, 2 }
  0x72   : > { %276 = vst [vmem:[%s247_s24 + $0x1] sm:$0xff] %v272_v3  ;;  %278 = vst [vmem:[%s247_s24 + $0x19] sm:$0xff] %v274_v8 }
  0x73   : > { %279 = vst [vmem:[%s247_s24 + $0x21] sm:$0xff] %v275_v10 }
  0x77   : > { %s953_s30 = smov (!%p290_p10, %s289_s30), 2 }
  0x78   : > { %s860_s4 = smul.u32 384, %s953_s30 }
  0x7a   : > { %s295_s22 = ssub.s32 768, %s860_s4 }
  0x7b   : > { %296 = vsyncadd %s281_s23, %s295_s22  ;;  %p435_p12 = scmp.ne.s32.totalorder %s860_s4, 0  ;;  %s448_s19 = smul.u32 768, %s655_s15 }
  0x7c   : > { %s304_s26 = sshll.u32 %s247_s24, 4  ;;  %s671_s10 = smov [#allocation7]   ;;  %s872_s26 = int_to_ptr.vmem [resolvable:$true] %s304_s26 }
  0x7d   : > { %s870_s7 = scalar_lea.hbm %s925_s3, %s448_s19  ;;  %s577_s9 = scalar_lea.vmem %s872_s26, %s860_s4 }
  0x7e   : > { %p578_p13 = scmp.ne.s32.totalorder %s872_s26, %s577_s9  ;;  %s581_s5 = sshll.u32 %s671_s10, 4  ;;  %s582_s5 = int_to_ptr.vmem [resolvable:$false] %s581_s5 }
  0x7f   : > { %s583_s15 = scalar_lea.vmem %s582_s5, 1536  ;;  %p584_p7 = scmp.lt.s32.totalorder %s872_s26, %s582_s5 }
  0x80   : > { %p579_p1 = pnand %p578_p13, %p435_p12  ;;  %p585_p4 = scmp.lt.s32.totalorder %s583_s15, %s577_s9 }
  0x82   : > { %p580_p3 = pneg %p579_p1  ;;  %p586_p8 = por %p585_p4, %p584_p7 }
  0x84   : > { %p587_p9 = pnand %p586_p8, %p580_p3 }
  0x86   : > { %590 = shalt.err (!%p587_p9)
}
  0x87   : > { %s591_s29 = scalar_lea.hbm %s870_s7, %s860_s4  ;;  %s595_s24 = scalar_lea.hbm %s925_s3, 1920 }
  0x88   : > { %p592_p0 = scmp.ne.s32.totalorder %s870_s7, %s591_s29  ;;  %p596_p5 = scmp.lt.u32.totalorder %s870_s7, %s925_s3 }
  0x89   : > { %p597_p6 = scmp.lt.u32.totalorder %s595_s24, %s591_s29  ;;  %p599_p13 = scmp.lt.u32.totalorder %s591_s29, %s870_s7 }
  0x8a   : > { %p593_p11 = pnand %p592_p0, %p435_p12 }
  0x8b   : > { %p598_p10 = por %p597_p6, %p596_p5 }
  0x8c   : > { %p594_p2 = pneg %p593_p11 }
  0x8d   : > { %p600_p1 = por %p599_p13, %p598_p10 }
  0x8f   : > { %p601_p3 = pnand %p600_p1, %p594_p2 }
  0x91   : > { %604 = shalt.err (!%p601_p3)
}
  0x92   : > { %s672_s22 = smov 128   ;;  %s673_s19 = smov 8  }
  0x93   : > { %310 = dma.vmem_to_hbm [thread:$0]  (%p435_p12), %s872_s26, %s860_s4, %s870_s7, %s281_s23, %s672_s22, %s672_s22, %s673_s19  }
  0x94 PF: > { %p465_p7 = scmp.ge.s32.totalorder %s663_s17, 2  ;;  %s319_s21 = sand.u32 1, %s643_s12  }
  0x95   : > { %p942_p4 = scmp.ne.s32.totalorder %s934_s28, 0  ;;  %s320_s6 = scalar_lea.sflag [#allocation4], %s319_s21 }
  0x97   : > { %p460_p8 = pnand %p465_p7, %p942_p4 }
  0x99   : > { %638 = dma.done.wait (!%p460_p8), %s320_s6, 768  }
  0x9a   : > { %640 = vsyncadd (!%p460_p8), %s320_s6, 4294966528  ;;  %s20_s17 = sadd.s32 1, %s663_s17   ;;  %s943_s12 = smov %s647_s13 }
  0x9b   : > { %p17_p9 = scmp.ge.s32.totalorder %s20_s17, 5   ;;  %s944_s13 = smov %s651_s14 }
  0x9c   : > { %s945_s14 = smov %s756_s27  ;;  %s946_s15 = smov %s659_s16 }
  0x9d   : > { %s947_s16 = smov %s949_s20  ;;  %19 = sbr.rel (!%p17_p9) target bundleno = 7 (0x7), region = 85 }
  0xa4   :  { %325 = vsyncpa [#allocation3], 1 }
  0xa5   :  { %327 = vsyncpa [#allocation3 + $0x1], 1 }
  0xa6   :  { %328 = vsyncpa [#allocation6], 1 }
  0xa7   :  { %329 = vsyncpa [#allocation4], 1 }
  0xa8   :  { %331 = vsyncpa [#allocation4 + $0x1], 1 }

</bundles_post_ra>
